<compile_context>
chip_gen: v7x
topology: tpu7x:2x2x1
jax: 0.10.0
libtpu: 0.0.40
codegen_flags: <defaults>
</compile_context>

<pallas_src>
import functools

import jax
import jax.numpy as jnp
from jax.experimental import pallas as pl
from jax.experimental.pallas import tpu as pltpu

# ---------------------------------------------------------------------------
# Model hyper-parameters (small, consistent with baeMLP's __init__ signature).
# ---------------------------------------------------------------------------
DIM = 64          # flattened image dim (e.g. 1x8x8 image)
NOISE_DIM = 8
ZDIM = 8
NHIDDEN = 32

PAIR = 2          # samples packed per kernel row (lane-dense packing factor)
MAX_TILE_ROWS = 8192   # ~9.4 MiB double-buffered f32 -> fits v5e's 16 MiB scoped VMEM

_FLOPS_PER_SAMPLE = 2 * ((DIM + NOISE_DIM) * NHIDDEN + NHIDDEN * ZDIM
                         + ZDIM * NHIDDEN + NHIDDEN * DIM)


def _round_up(n, m):
    return ((n + m - 1) // m) * m


def _choose_tile_rows(batch_rows, tile_rows):
    """Pick the per-step tile (in samples): multiple of 16, <= MAX_TILE_ROWS,
    and small enough that the grid has >= ~4 steps when the batch allows it."""
    tile_rows = _round_up(min(max(tile_rows, 16), MAX_TILE_ROWS), 16)
    quarter = _round_up(max(1, -(-batch_rows // 4)), 16)   # ceil(B/4), 16-aligned
    return max(16, min(tile_rows, quarter))


# ---------------------------------------------------------------------------
# Fused kernel: encoder MLP -> z, decoder MLP + sigmoid -> recon.
# All tensors are "paired": one kernel row holds PAIR consecutive samples, so
# the recon store is a full 128-lane slab and x loads are 128 lanes wide.
# Accumulation / bias / activation math is always f32; operands may be bf16.
# ---------------------------------------------------------------------------
def _bae_mlp_kernel(x_ref, n_ref,
                    w1x_ref, w1n_ref, b1e_ref,
                    w2e_ref, b2e_ref,
                    w1d_ref, b1d_ref,
                    w2d_ref, b2d_ref,
                    recon_ref, z_ref):
    # ---- encoder: (x @ W1x + noise @ W1n + b1) -> ReLU -> Linear ----
    h = jnp.dot(x_ref[...], w1x_ref[...], preferred_element_type=jnp.float32)
    h = h + jnp.dot(n_ref[...], w1n_ref[...], preferred_element_type=jnp.float32)
    h = jnp.maximum(h + b1e_ref[...], 0.0)                                   # ReLU, f32
    z = jnp.dot(h.astype(w2e_ref.dtype), w2e_ref[...],
                preferred_element_type=jnp.float32) + b2e_ref[...]
    z_ref[...] = z.astype(z_ref.dtype)

    # ---- decoder: Linear -> ReLU -> Linear -> Sigmoid ----
    hd = jnp.maximum(
        jnp.dot(z.astype(w1d_ref.dtype), w1d_ref[...],
                preferred_element_type=jnp.float32) + b1d_ref[...], 0.0)
    logits = jnp.dot(hd.astype(w2d_ref.dtype), w2d_ref[...],
                     preferred_element_type=jnp.float32) + b2d_ref[...]
    # sigmoid(x) = 0.5 * tanh(0.5 * x) + 0.5  (tanh -> EUP slot, no VPU divide)
    recon_ref[...] = (0.5 * jnp.tanh(0.5 * logits) + 0.5).astype(recon_ref.dtype)


@functools.partial(jax.jit, static_argnames=("tile_pairs", "out_dtype"))
def _run_pallas(x_pairs, noise_pairs, pk, tile_pairs, out_dtype):
    n_pairs = x_pairs.shape[0]
    # Ragged last block is masked by Pallas (partial input DMA / output writeback).
    grid = (pl.cdiv(n_pairs, tile_pairs),)

    def row_spec(width):        # batch-tiled, pipelined (double-buffered) across the grid
        return pl.BlockSpec((tile_pairs, width), lambda i: (i, 0))

    def const_spec(arr):        # constant block index -> stays resident in VMEM
        return pl.BlockSpec(arr.shape, lambda i: (0, 0))

    out_shapes = (
        jax.ShapeDtypeStruct((n_pairs, PAIR * DIM), out_dtype),     # packed recon
        jax.ShapeDtypeStruct((n_pairs, PAIR * ZDIM), out_dtype),    # packed z
    )

    # Advisory cost hint: this kernel is firmly HBM-bandwidth bound.
    out_itemsize = jnp.dtype(out_dtype).itemsize
    bytes_accessed = int(
        x_pairs.size * x_pairs.dtype.itemsize
        + noise_pairs.size * noise_pairs.dtype.itemsize
        + n_pairs * PAIR * (DIM + ZDIM) * out_itemsize
        + sum(int(v.size) * v.dtype.itemsize for v in pk.values()))
    n_samples = PAIR * n_pairs
    cost = pl.CostEstimate(flops=_FLOPS_PER_SAMPLE * n_samples,
                           transcendentals=DIM * n_samples,
                           bytes_accessed=bytes_accessed)

    recon_pk, z_pk = pl.pallas_call(
        _bae_mlp_kernel,
        grid=grid,
        out_shape=out_shapes,
        in_specs=[
            row_spec(PAIR * DIM),          # x (paired, 128 lanes)
            row_spec(PAIR * NOISE_DIM),    # noise (paired)
            const_spec(pk["w1x"]), const_spec(pk["w1n"]), const_spec(pk["b1e"]),
            const_spec(pk["w2e"]), const_spec(pk["b2e"]),
            const_spec(pk["w1d"]), const_spec(pk["b1d"]),
            const_spec(pk["w2d"]), const_spec(pk["b2d"]),
        ],
        out_specs=(row_spec(PAIR * DIM), row_spec(PAIR * ZDIM)),
        compiler_params=pltpu.CompilerParams(
            dimension_semantics=("parallel",),        # megacore-shardable batch axis
            vmem_limit_bytes=32 * 1024 * 1024),       # explicit (v5e default is 16 MiB)
        cost_estimate=cost,
    )(
        x_pairs, noise_pairs,
        pk["w1x"], pk["w1n"], pk["b1e"],
        pk["w2e"], pk["b2e"],
        pk["w1d"], pk["b1d"],
        pk["w2d"], pk["b2d"],
    )
    return recon_pk, z_pk


def bae_mlp_forward(x, noise, packed_params, tile_rows=4096, out_dtype=None):
    """Matches baeMLP.forward: returns (reconstructed_batch, z, noise).

    x/noise are streamed in the dtype they arrive in (pass bf16 data + bf16
    packed weights for the v6e/v7x streaming path); outputs use out_dtype
    (default: x's dtype). Dots always accumulate in f32.
    """
    x_flat = x.reshape(-1, DIM)                       # x.view(-1, dim)
    B = x_flat.shape[0]
    if out_dtype is None:
        out_dtype = x_flat.dtype

    # PAIR packing needs an even row count; pad at most ONE row.  No full
    # tile-multiple padding anymore: the ragged last grid block is masked.
    noise_in = noise
    if B % PAIR:
        pad = PAIR - (B % PAIR)
        x_flat = jnp.pad(x_flat, ((0, pad), (0, 0)))
        noise_in = jnp.pad(noise, ((0, pad), (0, 0)))
    n_rows = x_flat.shape[0]
    n_pairs = n_rows // PAIR

    tile = _choose_tile_rows(n_rows, tile_rows)

    # Free row-major reshapes: pack PAIR consecutive samples into one lane-dense row.
    x_pairs = x_flat.reshape(n_pairs, PAIR * DIM)
    noise_pairs = noise_in.reshape(n_pairs, PAIR * NOISE_DIM)

    recon_pk, z_pk = _run_pallas(x_pairs, noise_pairs, packed_params,
                                 tile // PAIR, jnp.dtype(out_dtype))

    recon = recon_pk.reshape(n_rows, DIM)[:B]          # undo packing (free) + drop pad row
    z = z_pk.reshape(n_rows, ZDIM)[:B]
    return recon, z, noise


# ---------------------------------------------------------------------------
# Parameter init (mimics nn.Linear default init U(-1/sqrt(fan_in), 1/sqrt(fan_in)),
# weights stored as (in, out)) and packing into the paired/block-diagonal form.
# ---------------------------------------------------------------------------
def _init_linear(key, fan_in, fan_out):
    kw, kb = jax.random.split(key)
    bound = 1.0 / jnp.sqrt(jnp.asarray(fan_in, jnp.float32))
    w = jax.random.uniform(kw, (fan_in, fan_out), jnp.float32, -bound, bound)
    b = jax.random.uniform(kb, (1, fan_out), jnp.float32, -bound, bound)
    return w, b


def init_params(key):
    k1, k2, k3, k4 = jax.random.split(key, 4)
    w1e, b1e = _init_linear(k1, DIM + NOISE_DIM, NHIDDEN)   # encode layer 1
    w2e, b2e = _init_linear(k2, NHIDDEN, ZDIM)              # encode layer 2
    w1d, b1d = _init_linear(k3, ZDIM, NHIDDEN)              # decode layer 1
    w2d, b2d = _init_linear(k4, NHIDDEN, DIM)               # decode layer 2
    return dict(w1e=w1e, b1e=b1e, w2e=w2e, b2e=b2e,
                w1d=w1d, b1d=b1d, w2d=w2d, b2d=b2d)


def _block_diag2(w):
    """blockdiag(w, w): (fi, fo) -> (2*fi, 2*fo). Off-diagonal zeros keep the math exact."""
    fi, fo = w.shape
    zero = jnp.zeros((fi, fo), w.dtype)
    top = jnp.concatenate([w, zero], axis=1)
    bot = jnp.concatenate([zero, w], axis=1)
    return jnp.concatenate([top, bot], axis=0)


def pack_params(params, dtype=jnp.float32):
    """Split W1 into x/noise parts and build paired (block-diagonal) kernel weights.

    `dtype` applies to the matmul weight operands (bf16 for the v6e/v7x
    streaming path); biases stay f32 (bias/activation math is f32 in-kernel).
    """
    w1e_x = params["w1e"][:DIM]        # (DIM, NHIDDEN)
    w1e_n = params["w1e"][DIM:]        # (NOISE_DIM, NHIDDEN)
    return dict(
        w1x=_block_diag2(w1e_x).astype(dtype),                 # (128, 64)
        w1n=_block_diag2(w1e_n).astype(dtype),                 # (16, 64)
        b1e=jnp.tile(params["b1e"], (1, PAIR)).astype(jnp.float32),   # (1, 64)
        w2e=_block_diag2(params["w2e"]).astype(dtype),         # (64, 16)
        b2e=jnp.tile(params["b2e"], (1, PAIR)).astype(jnp.float32),   # (1, 16)
        w1d=_block_diag2(params["w1d"]).astype(dtype),         # (16, 64)
        b1d=jnp.tile(params["b1d"], (1, PAIR)).astype(jnp.float32),   # (1, 64)
        w2d=_block_diag2(params["w2d"]).astype(dtype),         # (64, 128)
        b2d=jnp.tile(params["b2d"], (1, PAIR)).astype(jnp.float32),   # (1, 128)
    )


def _reference_forward(x, noise, params):
    x_flat = x.reshape(-1, DIM)
    xc = jnp.concatenate([x_flat, noise], axis=1)
    h = jnp.maximum(xc @ params["w1e"] + params["b1e"], 0.0)
    z = h @ params["w2e"] + params["b2e"]
    hd = jnp.maximum(z @ params["w1d"] + params["b1d"], 0.0)
    recon = jax.nn.sigmoid(hd @ params["w2d"] + params["b2d"])
    return recon, z


if __name__ == "__main__":
    key = jax.random.PRNGKey(0)
    (k_params, k_x, k_noise, k_x2, k_noise2, k_x3, k_noise3) = jax.random.split(key, 7)

    params = init_params(k_params)
    packed_f32 = pack_params(params)

    # ---- small case: NCHW input (B=2, C=1, H=8, W=8) -> flattened dim = 64 ----
    # Exercises a single ragged block (1 valid pair-row inside an 8-row tile).
    x = jax.random.uniform(k_x, (2, 1, 8, 8), jnp.float32)
    noise = jax.random.normal(k_noise, (x.shape[0], NOISE_DIM), jnp.float32)

    recon, z, noise_out = bae_mlp_forward(x, noise, packed_f32)
    jax.block_until_ready((recon, z, noise_out))

    recon_ref, z_ref = _reference_forward(x, noise, params)
    assert recon.shape == (2, DIM) and z.shape == (2, ZDIM) and noise_out.shape == (2, NOISE_DIM)
    assert jnp.allclose(recon, recon_ref, atol=1e-4, rtol=1e-4)
    assert jnp.allclose(z, z_ref, atol=1e-4, rtol=1e-4)

    # ---- larger f32 case: multi-step grid (>=4 steps), no full-array padding ----
    B2 = 2304
    x2 = jax.random.uniform(k_x2, (B2, 1, 8, 8), jnp.float32)
    noise2 = jax.random.normal(k_noise2, (B2, NOISE_DIM), jnp.float32)

    recon2, z2, _ = bae_mlp_forward(x2, noise2, packed_f32)
    jax.block_until_ready((recon2, z2))

    recon2_ref, z2_ref = _reference_forward(x2, noise2, params)
    assert recon2.shape == (B2, DIM) and z2.shape == (B2, ZDIM)
    assert jnp.allclose(recon2, recon2_ref, atol=1e-4, rtol=1e-4)
    assert jnp.allclose(z2, z2_ref, atol=1e-4, rtol=1e-4)

    # ---- bf16 streaming path (v6e/v7x): bf16 data + bf16 weights, f32 accumulation,
    #      ragged last grid block (500 pair-rows, tile of 128). Relaxed tolerance. ----
    packed_bf16 = pack_params(params, dtype=jnp.bfloat16)
    B3 = 1000
    x3 = jax.random.uniform(k_x3, (B3, 1, 8, 8), jnp.float32).astype(jnp.bfloat16)
    noise3 = jax.random.normal(k_noise3, (B3, NOISE_DIM), jnp.float32).astype(jnp.bfloat16)

    recon3, z3, _ = bae_mlp_forward(x3, noise3, packed_bf16)
    jax.block_until_ready((recon3, z3))

    recon3_ref, z3_ref = _reference_forward(x3.astype(jnp.float32),
                                            noise3.astype(jnp.float32), params)
    assert recon3.shape == (B3, DIM) and z3.shape == (B3, ZDIM)
    assert recon3.dtype == jnp.bfloat16 and z3.dtype == jnp.bfloat16
    assert jnp.allclose(recon3.astype(jnp.float32), recon3_ref, atol=5e-2, rtol=5e-2)
    assert jnp.allclose(z3.astype(jnp.float32), z3_ref, atol=5e-2, rtol=5e-2)

    print("KERNEL_OK")
</pallas_src>

<mosaic_0001>
module attributes {stable_mosaic.version = 11 : i64} {
  func.func @_bae_mlp_kernel(%arg0: i32, %arg1: memref<8x128xf32, #tpu.memory_space<vmem>>, %arg2: memref<8x16xf32, #tpu.memory_space<vmem>>, %arg3: memref<128x64xf32, #tpu.memory_space<vmem>>, %arg4: memref<16x64xf32, #tpu.memory_space<vmem>>, %arg5: memref<1x64xf32, #tpu.memory_space<vmem>>, %arg6: memref<64x16xf32, #tpu.memory_space<vmem>>, %arg7: memref<1x16xf32, #tpu.memory_space<vmem>>, %arg8: memref<16x64xf32, #tpu.memory_space<vmem>>, %arg9: memref<1x64xf32, #tpu.memory_space<vmem>>, %arg10: memref<64x128xf32, #tpu.memory_space<vmem>>, %arg11: memref<1x128xf32, #tpu.memory_space<vmem>>, %arg12: memref<8x128xf32, #tpu.memory_space<vmem>>, %arg13: memref<8x16xf32, #tpu.memory_space<vmem>>) attributes {dimension_semantics = [#tpu.dimension_semantics<parallel>], iteration_bounds = array<i64: 1>, scalar_prefetch = 0 : i64, scratch_operands = 0 : i64, tpu.core_type = #tpu.core_type<tc>, window_params = [{transform_indices = @transform_0, window_bounds = array<i64: 8, 128>}, {transform_indices = @transform_1, window_bounds = array<i64: 8, 16>}, {pipeline_mode = #tpu.pipeline_mode<synchronous>, transform_indices = @transform_2, window_bounds = array<i64: 128, 64>}, {pipeline_mode = #tpu.pipeline_mode<synchronous>, transform_indices = @transform_3, window_bounds = array<i64: 16, 64>}, {pipeline_mode = #tpu.pipeline_mode<synchronous>, transform_indices = @transform_4, window_bounds = array<i64: 1, 64>}, {pipeline_mode = #tpu.pipeline_mode<synchronous>, transform_indices = @transform_5, window_bounds = array<i64: 64, 16>}, {pipeline_mode = #tpu.pipeline_mode<synchronous>, transform_indices = @transform_6, window_bounds = array<i64: 1, 16>}, {pipeline_mode = #tpu.pipeline_mode<synchronous>, transform_indices = @transform_7, window_bounds = array<i64: 16, 64>}, {pipeline_mode = #tpu.pipeline_mode<synchronous>, transform_indices = @transform_8, window_bounds = array<i64: 1, 64>}, {pipeline_mode = #tpu.pipeline_mode<synchronous>, transform_indices = @transform_9, window_bounds = array<i64: 64, 128>}, {pipeline_mode = #tpu.pipeline_mode<synchronous>, transform_indices = @transform_10, window_bounds = array<i64: 1, 128>}, {transform_indices = @transform_11, window_bounds = array<i64: 8, 128>}, {transform_indices = @transform_12, window_bounds = array<i64: 8, 16>}]} {
    %c0 = arith.constant 0 : index
    %c0_0 = arith.constant 0 : index
    %0 = vector.load %arg1[%c0, %c0_0] : memref<8x128xf32, #tpu.memory_space<vmem>>, vector<8x128xf32>
    %c0_1 = arith.constant 0 : index
    %c0_2 = arith.constant 0 : index
    %1 = vector.load %arg3[%c0_1, %c0_2] : memref<128x64xf32, #tpu.memory_space<vmem>>, vector<128x64xf32>
    %cst = arith.constant dense<0.000000e+00> : vector<8x64xf32>
    %2 = tpu.matmul %0, %1, %cst {dimension_numbers = #tpu.dot_dimension_numbers<[1], [0], [0], [1], [0, 0, 1, 1], [], []>} : vector<8x128xf32>, vector<128x64xf32>, vector<8x64xf32> -> vector<8x64xf32>
    %c0_3 = arith.constant 0 : index
    %c0_4 = arith.constant 0 : index
    %3 = vector.load %arg2[%c0_3, %c0_4] : memref<8x16xf32, #tpu.memory_space<vmem>>, vector<8x16xf32>
    %c0_5 = arith.constant 0 : index
    %c0_6 = arith.constant 0 : index
    %4 = vector.load %arg4[%c0_5, %c0_6] : memref<16x64xf32, #tpu.memory_space<vmem>>, vector<16x64xf32>
    %cst_7 = arith.constant dense<0.000000e+00> : vector<8x64xf32>
    %5 = tpu.matmul %3, %4, %cst_7 {dimension_numbers = #tpu.dot_dimension_numbers<[1], [0], [0], [1], [0, 0, 1, 1], [], []>} : vector<8x16xf32>, vector<16x64xf32>, vector<8x64xf32> -> vector<8x64xf32>
    %6 = arith.addf %2, %5 : vector<8x64xf32>
    %c0_8 = arith.constant 0 : index
    %c0_9 = arith.constant 0 : index
    %7 = vector.load %arg5[%c0_8, %c0_9] : memref<1x64xf32, #tpu.memory_space<vmem>>, vector<1x64xf32>
    %8 = vector.broadcast %7 : vector<1x64xf32> to vector<8x64xf32>
    %9 = arith.addf %6, %8 : vector<8x64xf32>
    %cst_10 = arith.constant 0.000000e+00 : f32
    %10 = vector.broadcast %cst_10 : f32 to vector<8x64xf32>
    %11 = arith.maximumf %9, %10 : vector<8x64xf32>
    %c0_11 = arith.constant 0 : index
    %c0_12 = arith.constant 0 : index
    %12 = vector.load %arg6[%c0_11, %c0_12] : memref<64x16xf32, #tpu.memory_space<vmem>>, vector<64x16xf32>
    %cst_13 = arith.constant dense<0.000000e+00> : vector<8x16xf32>
    %13 = tpu.matmul %11, %12, %cst_13 {dimension_numbers = #tpu.dot_dimension_numbers<[1], [0], [0], [1], [0, 0, 1, 1], [], []>} : vector<8x64xf32>, vector<64x16xf32>, vector<8x16xf32> -> vector<8x16xf32>
    %c0_14 = arith.constant 0 : index
    %c0_15 = arith.constant 0 : index
    %14 = vector.load %arg7[%c0_14, %c0_15] : memref<1x16xf32, #tpu.memory_space<vmem>>, vector<1x16xf32>
    %15 = vector.broadcast %14 : vector<1x16xf32> to vector<8x16xf32>
    %16 = arith.addf %13, %15 : vector<8x16xf32>
    %c0_16 = arith.constant 0 : index
    %c0_17 = arith.constant 0 : index
    %17 = vector.load %arg13[%c0_16, %c0_17] : memref<8x16xf32, #tpu.memory_space<vmem>>, vector<8x16xf32>
    tpu.vector_store %arg13[%c0_16, %c0_17], %16 {strides = array<i32>} : memref<8x16xf32, #tpu.memory_space<vmem>>, vector<8x16xf32>,
    %c0_18 = arith.constant 0 : index
    %c0_19 = arith.constant 0 : index
    %18 = vector.load %arg8[%c0_18, %c0_19] : memref<16x64xf32, #tpu.memory_space<vmem>>, vector<16x64xf32>
    %cst_20 = arith.constant dense<0.000000e+00> : vector<8x64xf32>
    %19 = tpu.matmul %16, %18, %cst_20 {dimension_numbers = #tpu.dot_dimension_numbers<[1], [0], [0], [1], [0, 0, 1, 1], [], []>} : vector<8x16xf32>, vector<16x64xf32>, vector<8x64xf32> -> vector<8x64xf32>
    %c0_21 = arith.constant 0 : index
    %c0_22 = arith.constant 0 : index
    %20 = vector.load %arg9[%c0_21, %c0_22] : memref<1x64xf32, #tpu.memory_space<vmem>>, vector<1x64xf32>
    %21 = vector.broadcast %20 : vector<1x64xf32> to vector<8x64xf32>
    %22 = arith.addf %19, %21 : vector<8x64xf32>
    %cst_23 = arith.constant 0.000000e+00 : f32
    %23 = vector.broadcast %cst_23 : f32 to vector<8x64xf32>
    %24 = arith.maximumf %22, %23 : vector<8x64xf32>
    %c0_24 = arith.constant 0 : index
    %c0_25 = arith.constant 0 : index
    %25 = vector.load %arg10[%c0_24, %c0_25] : memref<64x128xf32, #tpu.memory_space<vmem>>, vector<64x128xf32>
    %cst_26 = arith.constant dense<0.000000e+00> : vector<8x128xf32>
    %26 = tpu.matmul %24, %25, %cst_26 {dimension_numbers = #tpu.dot_dimension_numbers<[1], [0], [0], [1], [0, 0, 1, 1], [], []>} : vector<8x64xf32>, vector<64x128xf32>, vector<8x128xf32> -> vector<8x128xf32>
    %c0_27 = arith.constant 0 : index
    %c0_28 = arith.constant 0 : index
    %27 = vector.load %arg11[%c0_27, %c0_28] : memref<1x128xf32, #tpu.memory_space<vmem>>, vector<1x128xf32>
    %28 = vector.broadcast %27 : vector<1x128xf32> to vector<8x128xf32>
    %29 = arith.addf %26, %28 : vector<8x128xf32>
    %cst_29 = arith.constant 5.000000e-01 : f32
    %30 = vector.broadcast %cst_29 : f32 to vector<8x128xf32>
    %31 = arith.mulf %30, %29 : vector<8x128xf32>
    %32 = math.tanh %31 : vector<8x128xf32>
    %cst_30 = arith.constant 5.000000e-01 : f32
    %33 = vector.broadcast %cst_30 : f32 to vector<8x128xf32>
    %34 = arith.mulf %33, %32 : vector<8x128xf32>
    %cst_31 = arith.constant 5.000000e-01 : f32
    %35 = vector.broadcast %cst_31 : f32 to vector<8x128xf32>
    %36 = arith.addf %34, %35 : vector<8x128xf32>
    %c0_32 = arith.constant 0 : index
    %c0_33 = arith.constant 0 : index
    %37 = vector.load %arg12[%c0_32, %c0_33] : memref<8x128xf32, #tpu.memory_space<vmem>>, vector<8x128xf32>
    tpu.vector_store %arg12[%c0_32, %c0_33], %36 {strides = array<i32>} : memref<8x128xf32, #tpu.memory_space<vmem>>, vector<8x128xf32>,
    return
  }
  func.func @transform_0(%arg0: i32) -> (i32, i32) {
    %c0_i32 = arith.constant 0 : i32
    %c0_i32_0 = arith.constant 0 : i32
    return %arg0, %c0_i32 : i32, i32
  }
  func.func @transform_1(%arg0: i32) -> (i32, i32) {
    %c0_i32 = arith.constant 0 : i32
    %c0_i32_0 = arith.constant 0 : i32
    return %arg0, %c0_i32 : i32, i32
  }
  func.func @transform_2(%arg0: i32) -> (i32, i32) {
    %c0_i32 = arith.constant 0 : i32
    %c0_i32_0 = arith.constant 0 : i32
    %c0_i32_1 = arith.constant 0 : i32
    return %c0_i32, %c0_i32_0 : i32, i32
  }
  func.func @transform_3(%arg0: i32) -> (i32, i32) {
    %c0_i32 = arith.constant 0 : i32
    %c0_i32_0 = arith.constant 0 : i32
    %c0_i32_1 = arith.constant 0 : i32
    return %c0_i32, %c0_i32_0 : i32, i32
  }
  func.func @transform_4(%arg0: i32) -> (i32, i32) {
    %c0_i32 = arith.constant 0 : i32
    %c0_i32_0 = arith.constant 0 : i32
    %c0_i32_1 = arith.constant 0 : i32
    return %c0_i32, %c0_i32_0 : i32, i32
  }
  func.func @transform_5(%arg0: i32) -> (i32, i32) {
    %c0_i32 = arith.constant 0 : i32
    %c0_i32_0 = arith.constant 0 : i32
    %c0_i32_1 = arith.constant 0 : i32
    return %c0_i32, %c0_i32_0 : i32, i32
  }
  func.func @transform_6(%arg0: i32) -> (i32, i32) {
    %c0_i32 = arith.constant 0 : i32
    %c0_i32_0 = arith.constant 0 : i32
    %c0_i32_1 = arith.constant 0 : i32
    return %c0_i32, %c0_i32_0 : i32, i32
  }
  func.func @transform_7(%arg0: i32) -> (i32, i32) {
    %c0_i32 = arith.constant 0 : i32
    %c0_i32_0 = arith.constant 0 : i32
    %c0_i32_1 = arith.constant 0 : i32
    return %c0_i32, %c0_i32_0 : i32, i32
  }
  func.func @transform_8(%arg0: i32) -> (i32, i32) {
    %c0_i32 = arith.constant 0 : i32
    %c0_i32_0 = arith.constant 0 : i32
    %c0_i32_1 = arith.constant 0 : i32
    return %c0_i32, %c0_i32_0 : i32, i32
  }
  func.func @transform_9(%arg0: i32) -> (i32, i32) {
    %c0_i32 = arith.constant 0 : i32
    %c0_i32_0 = arith.constant 0 : i32
    %c0_i32_1 = arith.constant 0 : i32
    return %c0_i32, %c0_i32_0 : i32, i32
  }
  func.func @transform_10(%arg0: i32) -> (i32, i32) {
    %c0_i32 = arith.constant 0 : i32
    %c0_i32_0 = arith.constant 0 : i32
    %c0_i32_1 = arith.constant 0 : i32
    return %c0_i32, %c0_i32_0 : i32, i32
  }
  func.func @transform_11(%arg0: i32) -> (i32, i32) {
    %c0_i32 = arith.constant 0 : i32
    %c0_i32_0 = arith.constant 0 : i32
    return %arg0, %c0_i32 : i32, i32
  }
  func.func @transform_12(%arg0: i32) -> (i32, i32) {
    %c0_i32 = arith.constant 0 : i32
    %c0_i32_0 = arith.constant 0 : i32
    return %arg0, %c0_i32 : i32, i32
  }
}

</mosaic_0001>

<bundles_post_ra>
// kernel: _run_pallas.1
= control target key start
LH: loop header
LB: loop body
LE: loop exit
PB: predicated region body
PF: predicated region fallthrough
CT: control target
= control target key end

     0   :  { %18 = vsyncpa [#allocation3], 0  ;;  %s1015_s0 = inlined_call_operand.vmem [shape: f32[1,128], index: 0, kind: input, shape index: {}]   ;;  %s1016_s1 = inlined_call_operand.vmem [shape: f32[1,16], index: 1, kind: input, shape index: {}]   ;;  %s1017_s2 = inlined_call_operand.vmem [shape: f32[128,64], index: 2, kind: input, shape index: {}]   ;;  %s1018_s3 = inlined_call_operand.vmem [shape: f32[16,64], index: 3, kind: input, shape index: {}]   ;;  %s1019_s4 = inlined_call_operand.vmem [shape: f32[1,64], index: 4, kind: input, shape index: {}]   ;;  %s1020_s5 = inlined_call_operand.vmem [shape: f32[64,16], index: 5, kind: input, shape index: {}]   ;;  %s1021_s6 = inlined_call_operand.vmem [shape: f32[1,16], index: 6, kind: input, shape index: {}]   ;;  %s1022_s7 = inlined_call_operand.vmem [shape: f32[16,64], index: 7, kind: input, shape index: {}]   ;;  %s1023_s8 = inlined_call_operand.vmem [shape: f32[1,64], index: 8, kind: input, shape index: {}]   ;;  %s1024_s9 = inlined_call_operand.vmem [shape: f32[64,128], index: 9, kind: input, shape index: {}]   ;;  %s1025_s10 = inlined_call_operand.vmem [shape: f32[1,128], index: 10, kind: input, shape index: {}]   ;;  %s1026_s11 = inlined_call_operand.hbm [shape: f32[1,128], index: 11, kind: output, shape index: {0}]   ;;  %s1027_s12 = inlined_call_operand.hbm [shape: f32[1,16], index: 12, kind: output, shape index: {1}]  }
   0x1   :  { %19 = vsyncpa [#allocation5], 0  ;;  %v60_v0 = vld [vmem:[%s1018_s3] sm:$0xff]  ;;  %v61_v1 = vld [vmem:[%s1018_s3 + $0x8] sm:$0xff]  ;;  %v760_v2 = vmov 0.0|0.0   ;;  %vm761_vm0 = vmmov 0  }
   0x2   :  { %649 = vmatprep.subr.bf16.mxu1 %v760_v2  ;;  %v650_v3 = vpack.c.bf16 %v61_v1, %v60_v0  ;;  %v43_v4 = vld [vmem:[%s1017_s2] sm:$0xff]  ;;  %v44_v5 = vld [vmem:[%s1017_s2 + $0x8] sm:$0xff]  ;;  %676 = vmatprep.subr.bf16.mxu0 %v760_v2  ;;  %v762_v6 = vmov 0.0   ;;  %vm62_vm1 = vcmask 130048   ;;  %v45_v9 = vld [vmem:[%s1017_s2 + $0x10] sm:$0xff]  ;;  %vm230_vm2 = vcmask 523264  }
   0x3   :  { %566 = vmatprep.mubr.msk.f32.mxu1 %vm761_vm0, %v762_v6  ;;  %620 = vmatprep.mubr.msk.f32.mxu0 %vm761_vm0, %v762_v6  ;;  %v59_v7 = vld [vmem:[%s1016_s1] sm:$0xff]  ;;  %v653_v8 = vpack.c.bf16 %v44_v5, %v43_v4  ;;  %v46_v10 = vld [vmem:[%s1017_s2 + $0x18] sm:$0xff]  ;;  %v48_v13 = vld [vmem:[%s1017_s2 + $0x28] sm:$0xff] }
   0x4   :  { %651 = vmatpush3.bf16.msra.mxu1 %v650_v3  ;;  %v656_v11 = vpack.c.bf16 %v46_v10, %v45_v9  ;;  %v47_v12 = vld [vmem:[%s1017_s2 + $0x20] sm:$0xff]  ;;  %v49_v15 = vld [vmem:[%s1017_s2 + $0x30] sm:$0xff]  ;;  %v50_v16 = vld [vmem:[%s1017_s2 + $0x38] sm:$0xff] }
   0x5   :  { %652 = vmatprep.subr.bf16.mxu1 %v760_v2  ;;  %v659_v14 = vpack.c.bf16 %v48_v13, %v47_v12  ;;  %v662_v17 = vpack.c.bf16 %v50_v16, %v49_v15  ;;  %v51_v18 = vld [vmem:[%s1017_s2 + $0x40] sm:$0xff]  ;;  %v52_v19 = vld [vmem:[%s1017_s2 + $0x48] sm:$0xff]  ;;  %v53_v21 = vld [vmem:[%s1017_s2 + $0x50] sm:$0xff] }
   0x6   :  { %v665_v20 = vpack.c.bf16 %v52_v19, %v51_v18  ;;  %v54_v22 = vld [vmem:[%s1017_s2 + $0x58] sm:$0xff]  ;;  %v55_v24 = vld [vmem:[%s1017_s2 + $0x60] sm:$0xff]  ;;  %v56_v25 = vld [vmem:[%s1017_s2 + $0x68] sm:$0xff] }
   0x7   :  { %567 = vmatmul.mubr.msk.f32.vlgmr.msra.gmra.mrb[0].mxu1 %vm62_vm1, %v59_v7  ;;  %v668_v23 = vpack.c.bf16 %v54_v22, %v53_v21  ;;  %v671_v26 = vpack.c.bf16 %v56_v25, %v55_v24  ;;  %v57_v27 = vld [vmem:[%s1017_s2 + $0x70] sm:$0xff]  ;;  %v58_v28 = vld [vmem:[%s1017_s2 + $0x78] sm:$0xff]  ;;  %v42_v30 = vld [vmem:[%s1015_s0] sm:$0xff] }
   0x8   :  { %654 = vmatpush3.bf16.msra.mxu1 %v653_v8  ;;  %601 = vmatprep.mubr.msk.f32.mxu1 %vm761_vm0, %v762_v6  ;;  %v674_v29 = vpack.c.bf16 %v58_v28, %v57_v27  ;;  %v215_v31 = vld [vmem:[%s1020_s5] sm:$0xff]  ;;  %v216_v32 = vld [vmem:[%s1020_s5 + $0x8] sm:$0xff]  ;;  %v217_v33 = vld [vmem:[%s1020_s5 + $0x10] sm:$0xff] }
   0x9   :  { %655 = vmatprep.subr.bf16.mxu1 %v760_v2  ;;  %v677_v34 = vpack.c.bf16 %v216_v32, %v215_v31  ;;  %v218_v35 = vld [vmem:[%s1020_s5 + $0x18] sm:$0xff]  ;;  %v219_v37 = vld [vmem:[%s1020_s5 + $0x20] sm:$0xff]  ;;  %v220_v38 = vld [vmem:[%s1020_s5 + $0x28] sm:$0xff] }
   0xa   :  { %v680_v36 = vpack.c.bf16 %v218_v35, %v217_v33  ;;  %v683_v39 = vpack.c.bf16 %v220_v38, %v219_v37  ;;  %v221_v40 = vld [vmem:[%s1020_s5 + $0x30] sm:$0xff]  ;;  %v222_v41 = vld [vmem:[%s1020_s5 + $0x38] sm:$0xff]  ;;  %v514_v46 = vld [vmem:[%s1019_s4] ss:$0 sm:$0xff] }
   0xb   :  { %678 = vmatpush3.bf16.msra.mxu0 %v677_v34  ;;  %v686_v42 = vpack.c.bf16 %v222_v41, %v221_v40  ;;  %v305_v49 = vld [vmem:[%s1022_s7] sm:$0xff]  ;;  %v306_v50 = vld [vmem:[%s1022_s7 + $0x8] sm:$0xff]  ;;  %v390_v61 = vld [vmem:[%s1024_s9 + $0x10] sm:$0xff] }
   0xc   :  { %657 = vmatpush3.bf16.msra.mxu1 %v656_v11  ;;  %679 = vmatprep.subr.bf16.mxu0 %v760_v2  ;;  %v689_v52 = vpack.c.bf16 %v306_v50, %v305_v49  ;;  %v388_v54 = vld [vmem:[%s1024_s9] sm:$0xff]  ;;  %v389_v55 = vld [vmem:[%s1024_s9 + $0x8] sm:$0xff]  ;;  %v391_v62 = vld [vmem:[%s1024_s9 + $0x18] sm:$0xff] }
   0xd   :  { %658 = vmatprep.subr.bf16.mxu1 %v760_v2  ;;  %v515_v56 = vld [vmem:[%s1021_s6] ss:$0 sm:$0xff]  ;;  %v692_v58 = vpack.c.bf16 %v389_v55, %v388_v54  ;;  %v695_v63 = vpack.c.bf16 %v391_v62, %v390_v61  ;;  %v393_v1 = vld [vmem:[%s1024_s9 + $0x28] sm:$0xff]  ;;  %v394_v4 = vld [vmem:[%s1024_s9 + $0x30] sm:$0xff] }
   0xe   :  { %v392_v0 = vld [vmem:[%s1024_s9 + $0x20] sm:$0xff]  ;;  %v395_v5 = vld [vmem:[%s1024_s9 + $0x38] sm:$0xff] }
   0xf   :  { %681 = vmatpush3.bf16.msra.mxu0 %v680_v36  ;;  %v698_v3 = vpack.c.bf16 %v393_v1, %v392_v0  ;;  %v517_v7 = vld [vmem:[%s1023_s8] ss:$0 sm:$0xff] }
  0x10   :  { %660 = vmatpush3.bf16.msra.mxu1 %v659_v14  ;;  %682 = vmatprep.subr.bf16.mxu0 %v760_v2 }
  0x11   :  { %661 = vmatprep.subr.bf16.mxu1 %v760_v2 }
  0x13   :  { %684 = vmatpush3.bf16.msra.mxu0 %v683_v39 }
  0x14   :  { %663 = vmatpush3.bf16.msra.mxu1 %v662_v17  ;;  %685 = vmatprep.subr.bf16.mxu0 %v760_v2 }
  0x15   :  { %664 = vmatprep.subr.bf16.mxu1 %v760_v2 }
  0x17   :  { %687 = vmatpush3.bf16.msra.mxu0 %v686_v42 }
  0x18   :  { %666 = vmatpush3.bf16.msra.mxu1 %v665_v20  ;;  %688 = vmatprep.subr.bf16.mxu0 %v760_v2 }
  0x19   :  { %667 = vmatprep.subr.bf16.mxu1 %v760_v2 }
  0x1c   :  { %669 = vmatpush3.bf16.msra.mxu1 %v668_v23 }
  0x1d   :  { %670 = vmatprep.subr.bf16.mxu1 %v760_v2 }
  0x20   :  { %672 = vmatpush3.bf16.msra.mxu1 %v671_v26 }
  0x21   :  { %673 = vmatprep.subr.bf16.mxu1 %v760_v2 }
  0x24   :  { %675 = vmatpush3.bf16.msra.mxu1 %v674_v29 }
  0x27   :  { %602 = vmatmul.mubr.f32.vlgmr.msra.gmra.mrb[2].mxu1 %v42_v30 }
  0xda   :  { %v132_v43 = vpop.f32.mrb[0].mxu1 }
  0xdb   :  { %v568_v44 = vpop.f32.mrb[1].mxu1 }
  0xfa   :  { %v202_v45 = vpop.f32.mrb[2].mxu1 }
  0xfb   :  { %v203_v47 = vadd.f32 %v202_v45, %v132_v43  ;;  %v603_v48 = vpop.f32.mrb[3].mxu1 }
  0xfd   :  { %v213_v51 = vadd.f32 %v514_v46, %v203_v47 }
  0xff   :  { %v214_v53 = vmax.f32 %v213_v51, 0.0 }
 0x101   :  { %621 = vmatmul.mubr.msk.f32.vlgmr.msra.gmra.mrb[0].mxu0 %vm230_vm2, %v214_v53 }
 0x102   :  { %690 = vmatpush3.bf16.msra.mxu0 %v689_v52  ;;  %627 = vmatprep.mubr.msk.f32.mxu0 %vm761_vm0, %v762_v6 }
 0x103   :  { %691 = vmatprep.subr.bf16.mxu0 %v760_v2 }
 0x1d4   :  { %v300_v57 = vpop.f32.mrb[0].mxu0 }
 0x1d5   :  { %v301_v59 = vadd.f32 %v515_v56, %v300_v57  ;;  %v622_v60 = vpop.f32.mrb[1].mxu0 }
 0x1d7   :  { %304 = vst.msk [vmem:[#allocation4] sm:$0xff] %vm62_vm1, %v301_v59  ;;  %628 = vmatmul.mubr.msk.f32.vlgmr.msra.gmra.mrb[2].mxu0 %vm62_vm1, %v301_v59 }
 0x1d8   :  { %693 = vmatpush3.bf16.msra.mxu0 %v692_v58  ;;  %646 = vmatprep.mubr.msk.f32.mxu0 %vm761_vm0, %v762_v6  ;;  %v701_v6 = vpack.c.bf16 %v395_v5, %v394_v4 }
 0x1d9   :  { %694 = vmatprep.subr.bf16.mxu0 %v760_v2 }
 0x1dc   :  { %696 = vmatpush3.bf16.msra.mxu0 %v695_v63 }
 0x1dd   :  { %697 = vmatprep.subr.bf16.mxu0 %v760_v2 }
 0x1e0   :  { %699 = vmatpush3.bf16.msra.mxu0 %v698_v3 }
 0x1e1   :  { %700 = vmatprep.subr.bf16.mxu0 %v760_v2  ;;  %v519_v2 = vld [vmem:[%s1025_s10] ss:$0 sm:$0xff] }
 0x1e4   :  { %702 = vmatpush3.bf16.msra.mxu0 %v701_v6 }
 0x2aa   :  { %v383_v8 = vpop.f32.mrb[2].mxu0 }
 0x2ab   :  { %v384_v9 = vadd.f32 %v517_v7, %v383_v8  ;;  %v629_v10 = vpop.f32.mrb[3].mxu0 }
 0x2ad   :  { %v387_v11 = vmax.f32 %v384_v9, 0.0 }
 0x2af   :  { %647 = vmatmul.mubr.msk.f32.vlgmr.msra.gmra.mrb[4].mxu0 %vm230_vm2, %v387_v11 }
 0x382   :  { %v472_v12 = vpop.f32.mrb[4].mxu0 }
 0x383   :  { %v473_v13 = vadd.f32 %v519_v2, %v472_v12  ;;  %v648_v14 = vpop.f32.mrb[5].mxu0 }
 0x385   :  { %v476_v15 = vmul.f32 0.5, %v473_v13 }
 0x387   :  { %710 = vtanh.f32 %v476_v15 }
 0x391   :  { %v711_v16 = vpop.eup %710 }
 0x392   :  { %v478_v17 = vmul.f32 0.5, %v711_v16 }
 0x394   :  { %v479_v18 = vadd.f32 0.5, %v478_v17 }
 0x396   :  { %480 = vst [vmem:[#allocation2] sm:$0xff] %v479_v18 }
 0x397   :  { %485 = vsyncadd [#allocation3], 112  ;;  %s763_s8 = smov [#allocation2]  }
 0x398   :  { %s486_s9 = sshll.u32 %s763_s8, 4  ;;  %s487_s9 = int_to_ptr.vmem [resolvable:$true] %s486_s9 }
 0x399   :  { %s712_s17 = scalar_lea.vmem %s487_s9, 16  ;;  %s716_s18 = scalar_lea.vmem %s487_s9, 128 }
 0x39a   :  { %p713_p0 = scmp.ne.s32.totalorder %s487_s9, %s712_s17  ;;  %p717_p1 = scmp.lt.s32.totalorder %s487_s9, %s487_s9 }
 0x39b   :  { %p718_p2 = scmp.lt.s32.totalorder %s716_s18, %s712_s17 }
 0x39d   :  { %p719_p3 = por %p718_p2, %p717_p1 }
 0x39f   :  { %p720_p4 = pnand %p719_p3, %p713_p0 }
 0x3a1   :  { %723 = shalt.err (!%p720_p4)
}
 0x3a2   :  { %s724_s20 = scalar_lea.hbm %s1026_s11, 16 }
 0x3a3   :  { %p725_p5 = scmp.ne.s32.totalorder %s1026_s11, %s724_s20  ;;  %p728_p6 = scmp.lt.u32.totalorder %s724_s20, %s1026_s11 }
 0x3a5   :  { %p730_p7 = pnand %p728_p6, %p725_p5 }
 0x3a7   :  { %733 = shalt.err (!%p730_p7)
}
 0x3a8   :  { %s764_s7 = smov 16   ;;  %s765_s23 = smov 1  }
 0x3a9   :  { %492 = dma.vmem_to_hbm [thread:$0]  %s487_s9, 16, %s1026_s11, [#allocation3], %s764_s7, %s764_s7, %s765_s23  }
 0x3aa   :  { %497 = vsyncadd [#allocation5], 112  ;;  %s766_s2 = smov [#allocation4]  }
 0x3ab   :  { %s498_s26 = sshll.u32 %s766_s2, 4  ;;  %s499_s26 = int_to_ptr.vmem [resolvable:$true] %s498_s26 }
 0x3ac   :  { %s734_s6 = scalar_lea.vmem %s499_s26, 16  ;;  %s738_s27 = scalar_lea.vmem %s499_s26, 128 }
 0x3ad   :  { %p735_p8 = scmp.ne.s32.totalorder %s499_s26, %s734_s6  ;;  %p739_p9 = scmp.lt.s32.totalorder %s499_s26, %s499_s26 }
 0x3ae   :  { %p740_p10 = scmp.lt.s32.totalorder %s738_s27, %s734_s6 }
 0x3b0   :  { %p741_p11 = por %p740_p10, %p739_p9 }
 0x3b2   :  { %p742_p12 = pnand %p741_p11, %p735_p8 }
 0x3b4   :  { %745 = shalt.err (!%p742_p12)
}
 0x3b5   :  { %s746_s3 = scalar_lea.hbm %s1027_s12, 16 }
 0x3b6   :  { %p747_p13 = scmp.ne.s32.totalorder %s1027_s12, %s746_s3  ;;  %p750_p0 = scmp.lt.u32.totalorder %s746_s3, %s1027_s12 }
 0x3b8   :  { %p752_p1 = pnand %p750_p0, %p747_p13 }
 0x3ba   :  { %755 = shalt.err (!%p752_p1)
}
 0x3bb   :  { %504 = dma.vmem_to_hbm [thread:$0]  %s499_s26, 16, %s1027_s12, [#allocation5], %s764_s7, %s764_s7, %s765_s23  }
 0x3bc   :  { %756 = dma.done.wait [#allocation3], 128  }
 0x3bd   :  { %757 = vsyncadd [#allocation3], 4294967168 }
 0x3be   :  { %758 = dma.done.wait [#allocation5], 128  }
 0x3bf   :  { %759 = vsyncadd [#allocation5], 4294967168 }
 0x3c0   :  { %511 = vsyncpa [#allocation3], 1 }
 0x3c1   :  { %512 = vsyncpa [#allocation5], 1 }

</bundles_post_ra>
